<compile_context>
chip_gen: v6e
topology: v6e:2x2x1
jax: 0.10.0
libtpu: 0.0.40
codegen_flags: <defaults>
</compile_context>

<pallas_src>
import functools
import math

import jax
import jax.numpy as jnp
from jax.experimental import pallas as pl
from jax.experimental.pallas import tpu as pltpu


def _round_up(x, m):
    return (x + m - 1) // m * m


def _vmem_budget_bytes():
    """Generation-aware scoped-VMEM budget (headroom below physical VMEM)."""
    cap = 64 << 20                       # conservative default = v7x physical
    try:
        info = pltpu.get_tpu_info()
        cap = int(getattr(info, "vmem_capacity_bytes", cap))
    except Exception:
        pass
    # v5e/v6e (128 MiB) -> 96 MiB cap; v7x (64 MiB) -> 48 MiB cap.
    return int(min(96 << 20, (cap * 3) // 4))


def _channel_conv_sigmoid(pooled, w_ref, k, pad):
    """k-tap zero-padded 1-D conv across channels (on lanes) + sigmoid.

    pooled: (1, C) f32, C on lanes.  Shifted-adds via pltpu.roll (XLU) and
    VPU muls — no MXU, no (C, C) banded weight matrix, no weight DMA stream.
    """
    C = pooled.shape[1]
    ch = jax.lax.broadcasted_iota(jnp.int32, (1, C), 1)
    y = jnp.zeros_like(pooled)
    for j in range(k):                              # tiny static unroll (k <= 9)
        d = j - pad
        if d == 0:
            shifted = pooled
        else:
            # np.roll semantics: rolled[c] = pooled[(c + d) mod C]
            shifted = pltpu.roll(pooled, shift=(-d) % C, axis=1)
        valid = (ch + d >= 0) & (ch + d < C)        # mask wrapped lanes (zero pad)
        y = y + w_ref[j] * jnp.where(valid, shifted, 0.0)
    return jax.nn.sigmoid(y)                        # (1, C) f32


# ----------------------------- fused single pass -----------------------------
def _eca_fused_kernel(x_ref, w_ref, o_ref, *, k, pad, inv_hw):
    """mean pool -> channel conv -> sigmoid -> multiply, one batch row resident."""
    xv = x_ref[...]                                              # (1, C, HW)
    pooled = jnp.sum(xv.astype(jnp.float32), axis=2) * inv_hw    # (1, C) f32
    gate = _channel_conv_sigmoid(pooled, w_ref, k, pad)          # (1, C) f32
    o_ref[...] = (xv * gate.astype(xv.dtype)[:, :, None]).astype(o_ref.dtype)


# --------------------------- two-pass tiled fallback --------------------------
def _pool_gate_kernel(x_ref, w_ref, gate_ref, acc_ref, *, k, pad, hw, hw_tile,
                      inv_hw):
    """Pass 1: spatial-sum over HW tiles; on the last tile do conv + sigmoid."""
    t = pl.program_id(1)

    @pl.when(t == 0)
    def _init():
        acc_ref[...] = jnp.zeros_like(acc_ref)

    x = x_ref[...].astype(jnp.float32)                 # (1, C, hw_tile)
    # Tail tile: out-of-bounds lanes are undefined on read -> mask to zero.
    pos = jax.lax.broadcasted_iota(jnp.int32, x.shape, 2) + t * hw_tile
    x = jnp.where(pos < hw, x, 0.0)
    acc_ref[...] += jnp.sum(x, axis=2)                 # (1, C)  C on lanes

    @pl.when(t == pl.num_programs(1) - 1)
    def _finalize():
        pooled = acc_ref[...] * inv_hw                 # mean over true HW
        gate_ref[...] = _channel_conv_sigmoid(pooled, w_ref, k, pad)[:, None, :]


def _apply_gate_kernel(x_ref, gate_ref, o_ref):
    """Pass 2: out = x * per-channel gate, broadcast over spatial lanes."""
    xv = x_ref[...]                                    # (1, C, hw_tile)
    g = gate_ref[...].astype(xv.dtype)                 # (1, C, 1)
    o_ref[...] = (xv * g).astype(o_ref.dtype)


# ---------------------------------- wrapper ----------------------------------
def eca_block_pallas(x_nchw, conv_w, *, hw_tile=2048, force_two_pass=False):
    """ECA block forward.

    Args:
      x_nchw: (B, C, H, W) input (PyTorch NCHW convention).
      conv_w: (k,) float32 Conv1d weight (torch weight shape (1, 1, k), flat).

    Returns:
      (B, C, H, W) output, same dtype as x.
    """
    B, C, H, W = x_nchw.shape
    HW = H * W
    k = int(conv_w.shape[0])
    pad = (k - 1) // 2
    conv_w = conv_w.astype(jnp.float32)
    itemsize = jnp.dtype(x_nchw.dtype).itemsize

    x_flat = x_nchw.reshape(B, C, HW)          # contiguous -> free re-layout
    budget = _vmem_budget_bytes()

    # Fused path needs (double-buffered in + out) + an f32 temp of the slab.
    slab = C * HW * itemsize
    fused_need = 4 * slab + C * HW * 4 + (2 << 20)

    if (not force_two_pass) and fused_need <= budget:
        vmem_limit = int(min(budget, max(32 << 20, fused_need)))
        out_flat = pl.pallas_call(
            functools.partial(_eca_fused_kernel, k=k, pad=pad, inv_hw=1.0 / HW),
            out_shape=jax.ShapeDtypeStruct((B, C, HW), x_nchw.dtype),
            grid_spec=pltpu.PrefetchScalarGridSpec(
                num_scalar_prefetch=0,
                grid=(B,),
                in_specs=[
                    pl.BlockSpec((1, C, HW), lambda b: (b, 0, 0)),
                    pl.BlockSpec(memory_space=pltpu.MemorySpace.SMEM),  # taps
                ],
                out_specs=pl.BlockSpec((1, C, HW), lambda b: (b, 0, 0)),
            ),
            compiler_params=pltpu.CompilerParams(
                dimension_semantics=("parallel",),
                vmem_limit_bytes=vmem_limit,
            ),
        )(x_flat, conv_w)
        return out_flat.reshape(B, C, H, W)

    # ---------------- fallback: two-pass tiled (no pad, masked tail) ----------
    hw_tile = min(_round_up(HW, 128), _round_up(hw_tile, 128))
    n_t = pl.cdiv(HW, hw_tile)
    blk = C * hw_tile * itemsize
    vmem_limit = int(min(budget,
                         max(32 << 20, 6 * blk + C * hw_tile * 4 + (2 << 20))))

    gates = pl.pallas_call(
        functools.partial(_pool_gate_kernel, k=k, pad=pad, hw=HW,
                          hw_tile=hw_tile, inv_hw=1.0 / HW),
        out_shape=jax.ShapeDtypeStruct((B, 1, C), jnp.float32),
        grid_spec=pltpu.PrefetchScalarGridSpec(
            num_scalar_prefetch=0,
            grid=(B, n_t),
            in_specs=[
                pl.BlockSpec((1, C, hw_tile), lambda b, t: (b, 0, t)),
                pl.BlockSpec(memory_space=pltpu.MemorySpace.SMEM),      # taps
            ],
            out_specs=pl.BlockSpec((1, 1, C), lambda b, t: (b, 0, 0)),
            scratch_shapes=[pltpu.VMEM((1, C), jnp.float32)],
        ),
        compiler_params=pltpu.CompilerParams(
            dimension_semantics=("parallel", "arbitrary"),
            vmem_limit_bytes=vmem_limit,
        ),
    )(x_flat, conv_w)

    # Tiny glue: channel-major gate so pass 2 is a pure lane broadcast
    # (middle dim is 1, so this reshape is the transpose and is free).
    gates_cm = gates.reshape(B, C, 1)

    out_flat = pl.pallas_call(
        _apply_gate_kernel,
        out_shape=jax.ShapeDtypeStruct((B, C, HW), x_nchw.dtype),
        grid_spec=pltpu.PrefetchScalarGridSpec(
            num_scalar_prefetch=0,
            grid=(B, n_t),
            in_specs=[
                pl.BlockSpec((1, C, hw_tile), lambda b, t: (b, 0, t)),
                pl.BlockSpec((1, C, 1), lambda b, t: (b, 0, 0)),
            ],
            out_specs=pl.BlockSpec((1, C, hw_tile), lambda b, t: (b, 0, t)),
        ),
        compiler_params=pltpu.CompilerParams(
            dimension_semantics=("parallel", "parallel"),
            vmem_limit_bytes=vmem_limit,
        ),
    )(x_flat, gates_cm)

    return out_flat.reshape(B, C, H, W)


def eca_block_ref(x_nchw, conv_w):
    """Pure-JAX reference matching the PyTorch module."""
    B, C, H, W = x_nchw.shape
    k = conv_w.shape[0]
    pad = (k - 1) // 2
    pooled = jnp.mean(x_nchw.astype(jnp.float32), axis=(2, 3))   # (B, C)
    padded = jnp.pad(pooled, ((0, 0), (pad, pad)))               # (B, C+2*pad)
    y = jnp.zeros((B, C), jnp.float32)
    for j in range(k):
        y = y + conv_w[j] * padded[:, j:j + C]
    y = jax.nn.sigmoid(y)
    return (x_nchw * y[:, :, None, None].astype(x_nchw.dtype)).astype(x_nchw.dtype)


if __name__ == "__main__":
    # Small shapes consistent with the module (YOLO attention channels are
    # 256..1024; C=128 keeps it small).  channel=128 -> kernel_size=5.
    channel, b_hp, gamma = 128, 1, 2
    kernel_size = int(abs((math.log(channel, 2) + b_hp) / gamma))
    kernel_size = kernel_size if kernel_size % 2 else kernel_size + 1   # -> 5

    key = jax.random.PRNGKey(0)
    kx1, kx2, kw = jax.random.split(key, 3)
    # Deterministic Conv1d weight (torch shape (1, 1, k) -> flat (k,)).
    conv_w = 0.1 * jax.random.normal(kw, (kernel_size,), dtype=jnp.float32) + 0.2

    # 1) Fused single-pass path, lane-multiple HW.
    x1 = jax.random.normal(kx1, (2, channel, 16, 16), dtype=jnp.float32)
    out1 = jax.block_until_ready(eca_block_pallas(x1, conv_w))
    assert out1.shape == x1.shape
    assert jnp.max(jnp.abs(out1 - eca_block_ref(x1, conv_w))) < 1e-4

    # 2) Fused path at a ragged YOLO-like spatial size (13x13 -> HW=169),
    #    exercising the pad-free full-block path.
    x2 = jax.random.normal(kx2, (2, channel, 13, 13), dtype=jnp.float32)
    out2 = jax.block_until_ready(eca_block_pallas(x2, conv_w))
    assert jnp.max(jnp.abs(out2 - eca_block_ref(x2, conv_w))) < 1e-4

    # 3) Forced two-pass tiled fallback with a masked tail tile.
    out3 = jax.block_until_ready(
        eca_block_pallas(x2, conv_w, hw_tile=128, force_two_pass=True))
    assert jnp.max(jnp.abs(out3 - eca_block_ref(x2, conv_w))) < 1e-4

    print("KERNEL_OK")
</pallas_src>

<mosaic_0001>
module attributes {stable_mosaic.version = 11 : i64} {
  func.func @_eca_fused_kernel(%arg0: i32, %arg1: memref<1x128x256xf32, #tpu.memory_space<vmem>>, %arg2: memref<5xf32, #tpu.memory_space<smem>>, %arg3: memref<1x128x256xf32, #tpu.memory_space<vmem>>) attributes {dimension_semantics = [#tpu.dimension_semantics<parallel>], iteration_bounds = array<i64: 2>, scalar_prefetch = 0 : i64, scratch_operands = 0 : i64, tpu.core_type = #tpu.core_type<tc>, window_params = [{transform_indices = @transform_0, window_bounds = array<i64: 1, 128, 256>}, {transform_indices = @transform_1, window_bounds = array<i64: 5>}, {transform_indices = @transform_2, window_bounds = array<i64: 1, 128, 256>}]} {
    %c0 = arith.constant 0 : index
    %c0_0 = arith.constant 0 : index
    %c0_1 = arith.constant 0 : index
    %0 = vector.load %arg1[%c0, %c0_0, %c0_1] : memref<1x128x256xf32, #tpu.memory_space<vmem>>, vector<1x128x256xf32>
    %cst = arith.constant dense<0.000000e+00> : vector<1x128xf32>
    %1 = vector.multi_reduction <add>, %0, %cst [2] : vector<1x128x256xf32> to vector<1x128xf32>
    %cst_2 = arith.constant 3.906250e-03 : f32
    %2 = vector.broadcast %cst_2 : f32 to vector<1x128xf32>
    %3 = arith.mulf %1, %2 : vector<1x128xf32>
    %4 = tpu.iota {dimensions = array<i32: 1>} : vector<1x128xi32>
    %cst_3 = arith.constant 0.000000e+00 : f32
    %5 = vector.broadcast %cst_3 : f32 to vector<1x128xf32>
    %c2_i32 = arith.constant 2 : i32
    %6 = tpu.dynamic_rotate %3 by %c2_i32 dim 1 : vector<1x128xf32>, i32 -> vector<1x128xf32>
    %c-2_i32 = arith.constant -2 : i32
    %7 = vector.broadcast %c-2_i32 : i32 to vector<1x128xi32>
    %8 = arith.addi %4, %7 : vector<1x128xi32>
    %c0_i32 = arith.constant 0 : i32
    %9 = vector.broadcast %c0_i32 : i32 to vector<1x128xi32>
    %10 = arith.cmpi sge, %8, %9 : vector<1x128xi32>
    %c-2_i32_4 = arith.constant -2 : i32
    %11 = vector.broadcast %c-2_i32_4 : i32 to vector<1x128xi32>
    %12 = arith.addi %4, %11 : vector<1x128xi32>
    %c128_i32 = arith.constant 128 : i32
    %13 = vector.broadcast %c128_i32 : i32 to vector<1x128xi32>
    %14 = arith.cmpi slt, %12, %13 : vector<1x128xi32>
    %15 = arith.andi %10, %14 : vector<1x128xi1>
    %c0_5 = arith.constant 0 : index
    %16 = memref.load %arg2[%c0_5] : memref<5xf32, #tpu.memory_space<smem>>
    %cst_6 = arith.constant 0.000000e+00 : f32
    %17 = vector.broadcast %cst_6 : f32 to vector<1x128xf32>
    %18 = arith.select %15, %6, %17 : vector<1x128xi1>, vector<1x128xf32>
    %19 = vector.broadcast %16 : f32 to vector<1x128xf32>
    %20 = arith.mulf %19, %18 : vector<1x128xf32>
    %21 = arith.addf %5, %20 : vector<1x128xf32>
    %c1_i32 = arith.constant 1 : i32
    %22 = tpu.dynamic_rotate %3 by %c1_i32 dim 1 : vector<1x128xf32>, i32 -> vector<1x128xf32>
    %c-1_i32 = arith.constant -1 : i32
    %23 = vector.broadcast %c-1_i32 : i32 to vector<1x128xi32>
    %24 = arith.addi %4, %23 : vector<1x128xi32>
    %c0_i32_7 = arith.constant 0 : i32
    %25 = vector.broadcast %c0_i32_7 : i32 to vector<1x128xi32>
    %26 = arith.cmpi sge, %24, %25 : vector<1x128xi32>
    %c-1_i32_8 = arith.constant -1 : i32
    %27 = vector.broadcast %c-1_i32_8 : i32 to vector<1x128xi32>
    %28 = arith.addi %4, %27 : vector<1x128xi32>
    %c128_i32_9 = arith.constant 128 : i32
    %29 = vector.broadcast %c128_i32_9 : i32 to vector<1x128xi32>
    %30 = arith.cmpi slt, %28, %29 : vector<1x128xi32>
    %31 = arith.andi %26, %30 : vector<1x128xi1>
    %c1 = arith.constant 1 : index
    %32 = memref.load %arg2[%c1] : memref<5xf32, #tpu.memory_space<smem>>
    %cst_10 = arith.constant 0.000000e+00 : f32
    %33 = vector.broadcast %cst_10 : f32 to vector<1x128xf32>
    %34 = arith.select %31, %22, %33 : vector<1x128xi1>, vector<1x128xf32>
    %35 = vector.broadcast %32 : f32 to vector<1x128xf32>
    %36 = arith.mulf %35, %34 : vector<1x128xf32>
    %37 = arith.addf %21, %36 : vector<1x128xf32>
    %c0_i32_11 = arith.constant 0 : i32
    %38 = vector.broadcast %c0_i32_11 : i32 to vector<1x128xi32>
    %39 = arith.addi %4, %38 : vector<1x128xi32>
    %c0_i32_12 = arith.constant 0 : i32
    %40 = vector.broadcast %c0_i32_12 : i32 to vector<1x128xi32>
    %41 = arith.cmpi sge, %39, %40 : vector<1x128xi32>
    %c0_i32_13 = arith.constant 0 : i32
    %42 = vector.broadcast %c0_i32_13 : i32 to vector<1x128xi32>
    %43 = arith.addi %4, %42 : vector<1x128xi32>
    %c128_i32_14 = arith.constant 128 : i32
    %44 = vector.broadcast %c128_i32_14 : i32 to vector<1x128xi32>
    %45 = arith.cmpi slt, %43, %44 : vector<1x128xi32>
    %46 = arith.andi %41, %45 : vector<1x128xi1>
    %c2 = arith.constant 2 : index
    %47 = memref.load %arg2[%c2] : memref<5xf32, #tpu.memory_space<smem>>
    %cst_15 = arith.constant 0.000000e+00 : f32
    %48 = vector.broadcast %cst_15 : f32 to vector<1x128xf32>
    %49 = arith.select %46, %3, %48 : vector<1x128xi1>, vector<1x128xf32>
    %50 = vector.broadcast %47 : f32 to vector<1x128xf32>
    %51 = arith.mulf %50, %49 : vector<1x128xf32>
    %52 = arith.addf %37, %51 : vector<1x128xf32>
    %c127_i32 = arith.constant 127 : i32
    %53 = tpu.dynamic_rotate %3 by %c127_i32 dim 1 : vector<1x128xf32>, i32 -> vector<1x128xf32>
    %c1_i32_16 = arith.constant 1 : i32
    %54 = vector.broadcast %c1_i32_16 : i32 to vector<1x128xi32>
    %55 = arith.addi %4, %54 : vector<1x128xi32>
    %c0_i32_17 = arith.constant 0 : i32
    %56 = vector.broadcast %c0_i32_17 : i32 to vector<1x128xi32>
    %57 = arith.cmpi sge, %55, %56 : vector<1x128xi32>
    %c1_i32_18 = arith.constant 1 : i32
    %58 = vector.broadcast %c1_i32_18 : i32 to vector<1x128xi32>
    %59 = arith.addi %4, %58 : vector<1x128xi32>
    %c128_i32_19 = arith.constant 128 : i32
    %60 = vector.broadcast %c128_i32_19 : i32 to vector<1x128xi32>
    %61 = arith.cmpi slt, %59, %60 : vector<1x128xi32>
    %62 = arith.andi %57, %61 : vector<1x128xi1>
    %c3 = arith.constant 3 : index
    %63 = memref.load %arg2[%c3] : memref<5xf32, #tpu.memory_space<smem>>
    %cst_20 = arith.constant 0.000000e+00 : f32
    %64 = vector.broadcast %cst_20 : f32 to vector<1x128xf32>
    %65 = arith.select %62, %53, %64 : vector<1x128xi1>, vector<1x128xf32>
    %66 = vector.broadcast %63 : f32 to vector<1x128xf32>
    %67 = arith.mulf %66, %65 : vector<1x128xf32>
    %68 = arith.addf %52, %67 : vector<1x128xf32>
    %c126_i32 = arith.constant 126 : i32
    %69 = tpu.dynamic_rotate %3 by %c126_i32 dim 1 : vector<1x128xf32>, i32 -> vector<1x128xf32>
    %c2_i32_21 = arith.constant 2 : i32
    %70 = vector.broadcast %c2_i32_21 : i32 to vector<1x128xi32>
    %71 = arith.addi %4, %70 : vector<1x128xi32>
    %c0_i32_22 = arith.constant 0 : i32
    %72 = vector.broadcast %c0_i32_22 : i32 to vector<1x128xi32>
    %73 = arith.cmpi sge, %71, %72 : vector<1x128xi32>
    %c2_i32_23 = arith.constant 2 : i32
    %74 = vector.broadcast %c2_i32_23 : i32 to vector<1x128xi32>
    %75 = arith.addi %4, %74 : vector<1x128xi32>
    %c128_i32_24 = arith.constant 128 : i32
    %76 = vector.broadcast %c128_i32_24 : i32 to vector<1x128xi32>
    %77 = arith.cmpi slt, %75, %76 : vector<1x128xi32>
    %78 = arith.andi %73, %77 : vector<1x128xi1>
    %c4 = arith.constant 4 : index
    %79 = memref.load %arg2[%c4] : memref<5xf32, #tpu.memory_space<smem>>
    %cst_25 = arith.constant 0.000000e+00 : f32
    %80 = vector.broadcast %cst_25 : f32 to vector<1x128xf32>
    %81 = arith.select %78, %69, %80 : vector<1x128xi1>, vector<1x128xf32>
    %82 = vector.broadcast %79 : f32 to vector<1x128xf32>
    %83 = arith.mulf %82, %81 : vector<1x128xf32>
    %84 = arith.addf %68, %83 : vector<1x128xf32>
    %85 = arith.negf %84 : vector<1x128xf32>
    %86 = math.exp %85 : vector<1x128xf32>
    %cst_26 = arith.constant 1.000000e+00 : f32
    %87 = vector.broadcast %cst_26 : f32 to vector<1x128xf32>
    %88 = arith.addf %87, %86 : vector<1x128xf32>
    %89 = arith.divf %87, %88 : vector<1x128xf32>
    %90 = vector.shape_cast %89 : vector<1x128xf32> to vector<1x128x1xf32>
    %91 = vector.broadcast %90 : vector<1x128x1xf32> to vector<1x128x256xf32>
    %92 = arith.mulf %0, %91 : vector<1x128x256xf32>
    %c0_27 = arith.constant 0 : index
    %c0_28 = arith.constant 0 : index
    %c0_29 = arith.constant 0 : index
    %93 = vector.load %arg3[%c0_27, %c0_28, %c0_29] : memref<1x128x256xf32, #tpu.memory_space<vmem>>, vector<1x128x256xf32>
    tpu.vector_store %arg3[%c0_27, %c0_28, %c0_29], %92 {strides = array<i32>} : memref<1x128x256xf32, #tpu.memory_space<vmem>>, vector<1x128x256xf32>,
    return
  }
  func.func @transform_0(%arg0: i32) -> (i32, i32, i32) {
    %c0_i32 = arith.constant 0 : i32
    %c0_i32_0 = arith.constant 0 : i32
    %c0_i32_1 = arith.constant 0 : i32
    return %arg0, %c0_i32, %c0_i32_0 : i32, i32, i32
  }
  func.func @transform_1(%arg0: i32) -> i32 {
    %c0_i32 = arith.constant 0 : i32
    %c0_i32_0 = arith.constant 0 : i32
    return %c0_i32 : i32
  }
  func.func @transform_2(%arg0: i32) -> (i32, i32, i32) {
    %c0_i32 = arith.constant 0 : i32
    %c0_i32_0 = arith.constant 0 : i32
    %c0_i32_1 = arith.constant 0 : i32
    return %arg0, %c0_i32, %c0_i32_0 : i32, i32, i32
  }
}

</mosaic_0001>

<bundles_post_ra>
// kernel: tpu_custom_call.1
= control target key start
LH: loop header
LB: loop body
LE: loop exit
PB: predicated region body
PF: predicated region fallthrough
CT: control target
= control target key end

     0   :  { %7 = vsyncpa [#allocation3], 0  ;;  %s1343_s0 = inlined_call_operand.hbm [shape: f32[2,128,256], index: 0, kind: input, shape index: {}]   ;;  %s1344_s1 = inlined_call_operand.vmem [shape: f32[5], index: 1, kind: input, shape index: {}]   ;;  %s1345_s2 = inlined_call_operand.hbm [shape: f32[2,128,256], index: 2, kind: output, shape index: {}]  }
   0x1   :  { %9 = vsyncpa [#allocation3 + $0x1], 0 }
   0x2   :  { %10 = vsyncpa [#allocation5], 0 }
   0x3   :  { %11 = vsyncpa [#allocation4], 0 }
   0x4   :  { %13 = vsyncpa [#allocation4 + $0x1], 0  ;;  %s919_s9 = smov 0   ;;  %s921_s10 = smov 0  }
   0x5   :  { %s923_s11 = smov 0   ;;  %s925_s12 = smov 0  }
   0x6 LB: > { %s940_s13 = sadd.s32 4294967295, %s891_s12   ;;  %s688_s14 = sadd.s32 4294967294, %s891_s12   ;;  %s891_s12 = sphi %s925_s12, %s1367_s12   ;;  %s887_s11 = sphi %s923_s11, %s1366_s11   ;;  %s883_s10 = sphi %s921_s10, %s1365_s10   ;;  %s879_s9 = sphi %s919_s9, %s1364_s9  }
   0x7   : > { %s944_s15 = sadd.s32 1, %s891_s12   ;;  %s26_s16 = sadd.s32 1, %s887_s11 }
   0x8   : > { %s23_s17 = ssub.s32 %s891_s12, %s944_s15  ;;  %p33_p0 = scmp.ne.s32.totalorder %s887_s11, %s883_s10 }
   0x9   : > { %p24_p1 = scmp.eq.s32.totalorder %s23_s17, 0  ;;  %p34_p2 = scmp.eq.s32.totalorder %s891_s12, 0 }
   0xa   : > { %p39_p3 = scmp.ne.s32.totalorder %s883_s10, %s879_s9  ;;  %p1347_p4 = scmp.eq.s32.totalorder %s940_s13, 0 }
   0xb   : > { %s956_s18 = scalar_select %p24_p1, %s887_s11, %s26_s16  }
   0xc   : > { %p958_p5 = por %p34_p2, %p33_p0  ;;  %p964_p6 = por %p1347_p4, %p39_p3 }
   0xd   : > { %p84_p7 = scmp.eq.s32.totalorder %s940_s13, 1  ;;  %p90_p8 = scmp.eq.s32.totalorder %s688_s14, 1 }
   0xe   : > { %s1351_s20 = scalar_select %p964_p6, 1, 0 }
   0xf   : > { %p689_p9 = scmp.ge.s32.totalorder %s891_s12, 1  ;;  %p97_p10 = scmp.lt.s32.totalorder %s891_s12, 3 }
  0x10   : > { %p971_p11 = por %p84_p7, %p33_p0  ;;  %p975_p12 = por %p90_p8, %p39_p3 }
  0x11   : > { %p979_p13 = pnand %p689_p9, %p97_p10  ;;  %s110_s26 = sshll.u32 %s1344_s1, 4  ;;  %s111_s26 = int_to_ptr.vmem [resolvable:$true] %s110_s26 }
  0x12   : > { %s1352_s21 = scalar_select %p971_p11, 1, 0 }
  0x13   : > { %s1353_s22 = scalar_select %p975_p12, 1, 0 }
  0x14   : > { %s1354_s23 = scalar_select %p979_p13, 1, 0 }
  0x15   : > { %p719_p1 = pneg %p979_p13  ;;  %p732_p2 = scmp.lt.s32.totalorder %s891_s12, 2 }
  0x16   : > { %s121_s28 = sand.u32 1, %s887_s11   ;;  %s780_s3 = scalar_lea.vmem %s111_s26, 16 }
  0x17   : > { %p992_p7 = pnand %p719_p1, %p1347_p4  ;;  %p999_p3 = pnand %p732_p2, %p958_p5 }
  0x18   : > { %s692_s30 = sshll.u32 %s121_s28, 8  ;;  %p781_p8 = scmp.ne.s32.totalorder %s111_s26, %s780_s3 }
  0x19   : > { %p782_p9 = pneg %p992_p7  ;;  %p788_p12 = scmp.lt.s32.totalorder %s111_s26, %s111_s26 }
  0x1a   : > { %p789_p11 = scmp.lt.s32.totalorder %s780_s3, %s780_s3 }
  0x1b   : > { %p783_p10 = pnand %p782_p9, %p781_p8 }
  0x1c   : > { %p790_p1 = por %p789_p11, %p788_p12 }
  0x1d   : > { %p784_p0 = pneg %p783_p10 }
  0x1f   : > { %p791_p4 = pnand %p790_p1, %p784_p0 }
  0x21   : > { %794 = shalt.err (!%p791_p4)
}
  0x22   : > { %s893_s4 = smov [#allocation6]   ;;  %s709_s5 = sshll.u32 %s891_s12, 12 }
  0x23   : > { %722 = dma.vmem_to_smem (!%p992_p7), %s111_s26, 16, %s893_s4, [#allocation5]  }
  0x24   : > { %s125_s6 = scalar_lea.vmem [#allocation2], %s692_s30  ;;  %s1011_s16 = scalar_lea.hbm %s1343_s0, %s709_s5 }
  0x25   : > { %s132_s7 = sshll.u32 %s125_s6, 4  ;;  %s1015_s17 = scalar_lea.sflag [#allocation3], %s121_s28  ;;  %s1013_s7 = int_to_ptr.vmem [resolvable:$true] %s132_s7 }
  0x26   : > { %s795_s19 = scalar_lea.hbm %s1011_s16, 4096  ;;  %p797_p5 = pneg %p999_p3 }
  0x27   : > { %p796_p4 = scmp.ne.s32.totalorder %s1011_s16, %s795_s19  ;;  %s800_s26 = scalar_lea.hbm %s1343_s0, 8192 }
  0x28   : > { %p801_p0 = scmp.lt.s32.totalorder %s1011_s16, %s1343_s0  ;;  %p802_p2 = scmp.lt.s32.totalorder %s800_s26, %s795_s19 }
  0x29   : > { %p798_p11 = pnand %p797_p5, %p796_p4 }
  0x2a   : > { %p803_p7 = por %p802_p2, %p801_p0 }
  0x2b   : > { %p799_p12 = pneg %p798_p11 }
  0x2d   : > { %p804_p8 = pnand %p803_p7, %p799_p12 }
  0x2f   : > { %807 = shalt.err (!%p804_p8)
}
  0x30   : > { %s808_s28 = scalar_lea.vmem %s1013_s7, 4096  ;;  %s894_s3 = smov [#allocation2]  }
  0x31   : > { %p809_p9 = scmp.ne.s32.totalorder %s1013_s7, %s808_s28  ;;  %s813_s4 = sshll.u32 %s894_s3, 4  ;;  %s814_s4 = int_to_ptr.vmem [resolvable:$false] %s813_s4 }
  0x32   : > { %s815_s5 = scalar_lea.vmem %s814_s4, 8192  ;;  %p816_p4 = scmp.lt.s32.totalorder %s1013_s7, %s814_s4 }
  0x33   : > { %p811_p10 = pnand %p809_p9, %p797_p5  ;;  %p817_p11 = scmp.lt.s32.totalorder %s815_s5, %s808_s28 }
  0x35   : > { %p812_p1 = pneg %p811_p10  ;;  %p818_p6 = por %p817_p11, %p816_p4 }
  0x37   : > { %p819_p13 = pnand %p818_p6, %p812_p1 }
  0x39   : > { %822 = shalt.err (!%p819_p13)
}
  0x3a   : > { %s895_s6 = smov 256   ;;  %s896_s8 = smov 16  }
  0x3b   : > { %726 = dma.hbm_to_vmem [thread:$0]  (!%p999_p3), %s1011_s16, 4096, %s1013_s7, %s1015_s17, %s895_s6, %s895_s6, %s896_s8  }
  0x3c   : > { %p1357_p5 = scmp.ne.s32.totalorder %s1354_s23, 0 }
  0x3d   : > { %s1039_s14 = sand.u32 (!%p1357_p5), 1, %s883_s10   ;;  %p1358_p6 = scmp.ne.s32.totalorder (!%p1357_p5), %s1351_s20, 0 }
  0x3e   : > { %144 = sbr.rel (%p1357_p5) target bundleno = 571 (0x23b), region = 28  ;;  %s696_s19 = sshll.u32 (!%p1357_p5), %s1039_s14, 8 }
  0x3f   : > { %s147_s24 = scalar_lea.sflag (!%p1357_p5), [#allocation3], %s1039_s14  ;;  %s1045_s25 = scalar_lea.vmem (!%p1357_p5), [#allocation2], %s696_s19 }
  0x43   : > { %866 = dma.done.wait (%p1358_p6), %s147_s24, 4096  }
  0x44   : > { %868 = vsyncadd (%p1358_p6), %s147_s24, 4294963200  ;;  %p1359_p13 = scmp.eq.s32.totalorder %s940_s13, 0 }
  0x46   : > { %870 = dma.done.wait (%p1359_p13), [#allocation5], 16   ;;  %p1360_p3 = pmov %p1359_p13 }
  0x48   : > { %872 = vsyncadd (%p1360_p3), [#allocation5], 4294967280 }
  0x49   : > { %159 = sfence }
  0x4a   : > { %v1056_v0 = vld [vmem:[%s1045_s25] sm:$0xff]  ;;  %v1059_v1 = vld [vmem:[%s1045_s25 + $0x8] sm:$0xff]  ;;  %v1070_v5 = vld [vmem:[%s1045_s25 + $0x10] sm:$0xff]  ;;  %v272_v48 = vlaneseq  ;;  %vm299_vm0 = vcmask 130112   ;;  %vm306_vm1 = vcmask 195712   ;;  %vm313_vm2 = vcmask 261312  }
  0x4b   : > { %v1062_v2 = vld [vmem:[%s1045_s25 + $0x20] sm:$0xff]  ;;  %v208_v3 = vadd.f32 %v1059_v1, %v1056_v0  ;;  %v1067_v4 = vld [vmem:[%s1045_s25 + $0x28] sm:$0xff]  ;;  %v1073_v6 = vld [vmem:[%s1045_s25 + $0x18] sm:$0xff]  ;;  %vm320_vm3 = vcmask 326912   ;;  %vm327_vm4 = vcmask 392512   ;;  %vm334_vm5 = vcmask 458112  }
  0x4c   : > { %v214_v7 = vadd.f32 %v1067_v4, %v1062_v2  ;;  %v1078_v8 = vld [vmem:[%s1045_s25 + $0x30] sm:$0xff]  ;;  %v1081_v9 = vld [vmem:[%s1045_s25 + $0x38] sm:$0xff]  ;;  %v211_v10 = vadd.f32 %v1073_v6, %v1070_v5  ;;  %v1088_v12 = vld [vmem:[%s1045_s25 + $0x40] sm:$0xff]  ;;  %v1183_v49 = vand.u32 127, %v272_v48  ;;  %v1185_v50 = vshrl.u32 %v272_v48, 7  ;;  %s897_s20 = smov 1  }
  0x4d   : > { %209 = vadd.xlane.f32.xlu0 %v208_v3  ;;  %v217_v11 = vadd.f32 %v1081_v9, %v1078_v8  ;;  %v1091_v13 = vld [vmem:[%s1045_s25 + $0x48] sm:$0xff]  ;;  %v1094_v14 = vld [vmem:[%s1045_s25 + $0x50] sm:$0xff]  ;;  %v1097_v15 = vld [vmem:[%s1045_s25 + $0x58] sm:$0xff]  ;;  %vm341_vm6 = vcmask 523712   ;;  %vm348_vm7 = vcmask 589312   ;;  %vm355_vm8 = vcmask 654912  }
  0x4e   : > { %215 = vadd.xlane.f32.xlu1 %v214_v7  ;;  %v220_v16 = vadd.f32 %v1091_v13, %v1088_v12  ;;  %v223_v17 = vadd.f32 %v1097_v15, %v1094_v14  ;;  %v1104_v18 = vld [vmem:[%s1045_s25 + $0x60] sm:$0xff]  ;;  %v1107_v19 = vld [vmem:[%s1045_s25 + $0x68] sm:$0xff]  ;;  %v1110_v20 = vld [vmem:[%s1045_s25 + $0x70] sm:$0xff]  ;;  %v294_v51 = vadd.s32 4294967288, %v1183_v49  ;;  %v301_v53 = vadd.s32 4294967280, %v1183_v49  ;;  %s898_s23 = smov 2  }
  0x4f   : > { %v1113_v21 = vld [vmem:[%s1045_s25 + $0x78] sm:$0xff]  ;;  %v226_v22 = vadd.f32 %v1107_v19, %v1104_v18  ;;  %v1120_v24 = vld [vmem:[%s1045_s25 + $0x80] sm:$0xff]  ;;  %v1123_v25 = vld [vmem:[%s1045_s25 + $0x88] sm:$0xff]  ;;  %v308_v54 = vadd.s32 4294967272, %v1183_v49  ;;  %v292_v56 = vsub.s32 %v1183_v49, %v1185_v50  ;;  %v315_v59 = vadd.s32 4294967264, %v1183_v49  ;;  %s899_s29 = smov 127  }
  0x50   : > { %v229_v23 = vadd.f32 %v1113_v21, %v1110_v20  ;;  %v1126_v26 = vld [vmem:[%s1045_s25 + $0x90] sm:$0xff]  ;;  %v1129_v27 = vld [vmem:[%s1045_s25 + $0x98] sm:$0xff]  ;;  %v232_v28 = vadd.f32 %v1123_v25, %v1120_v24  ;;  %v1136_v30 = vld [vmem:[%s1045_s25 + $0xa0] sm:$0xff]  ;;  %v297_v58 = vsub.s32 %v294_v51, %v1185_v50  ;;  %v304_v60 = vsub.s32 %v301_v53, %v1185_v50  ;;  %s900_s7 = smov 126   ;;  %s699_s16 = sld [smem:[#allocation6 + $0x1]] }
  0x51   : > { %212 = vadd.xlane.f32.xlu0 %v211_v10  ;;  %v235_v29 = vadd.f32 %v1129_v27, %v1126_v26  ;;  %v1139_v31 = vld [vmem:[%s1045_s25 + $0xa8] sm:$0xff]  ;;  %v1142_v32 = vld [vmem:[%s1045_s25 + $0xb0] sm:$0xff]  ;;  %v1145_v33 = vld [vmem:[%s1045_s25 + $0xb8] sm:$0xff]  ;;  %v311_v63 = vsub.s32 %v308_v54, %v1185_v50  ;;  %v322_v3 = vadd.s32 4294967256, %v1183_v49  ;;  %vm362_vm9 = vcmask 720512   ;;  %s406_s17 = sld [smem:[#allocation6]] }
  0x52   : > { %218 = vadd.xlane.f32.xlu1 %v217_v11  ;;  %v238_v34 = vadd.f32 %v1139_v31, %v1136_v30  ;;  %v241_v35 = vadd.f32 %v1145_v33, %v1142_v32  ;;  %v1152_v36 = vld [vmem:[%s1045_s25 + $0xc0] sm:$0xff]  ;;  %v1155_v37 = vld [vmem:[%s1045_s25 + $0xc8] sm:$0xff]  ;;  %v1158_v38 = vld [vmem:[%s1045_s25 + $0xd0] sm:$0xff]  ;;  %vm369_vm10 = vcmask 786112   ;;  %vm376_vm11 = vcmask 851712   ;;  %s700_s26 = sld [smem:[#allocation6 + $0x2]] }
  0x53   : > { %v1161_v39 = vld [vmem:[%s1045_s25 + $0xd8] sm:$0xff]  ;;  %v244_v40 = vadd.f32 %v1155_v37, %v1152_v36  ;;  %v1168_v42 = vld [vmem:[%s1045_s25 + $0xe0] sm:$0xff]  ;;  %v1171_v43 = vld [vmem:[%s1045_s25 + $0xe8] sm:$0xff]  ;;  %vm383_vm12 = vcmask 917312   ;;  %vm390_vm13 = vcmask 982912   ;;  %vm397_vm14 = vcmask 1048512  }
  0x54   : > { %v247_v41 = vadd.f32 %v1161_v39, %v1158_v38  ;;  %v1174_v44 = vld [vmem:[%s1045_s25 + $0xf0] sm:$0xff]  ;;  %v1177_v45 = vld [vmem:[%s1045_s25 + $0xf8] sm:$0xff]  ;;  %v250_v46 = vadd.f32 %v1171_v43, %v1168_v42  ;;  %s701_s27 = sld [smem:[#allocation6 + $0x3]]  ;;  %s1231_s28 = scalar_lea.vmem [#allocation7], %s696_s19 }
  0x55   : > { %221 = vadd.xlane.f32.xlu0 %v220_v16  ;;  %v253_v47 = vadd.f32 %v1177_v45, %v1174_v44  ;;  %s702_s30 = sld [smem:[#allocation6 + $0x4]]  ;;  %s710_s3 = sshll.u32 %s940_s13, 12 }
  0x56   : > { %224 = vadd.xlane.f32.xlu1 %v223_v17  ;;  %s603_s4 = sshll.u32 %s1231_s28, 4  ;;  %s1290_s8 = scalar_lea.hbm %s1345_s2, %s710_s3  ;;  %s1292_s4 = int_to_ptr.vmem [resolvable:$true] %s603_s4 }
  0x57   : > { %s590_s13 = scalar_lea.sflag [#allocation4], %s1039_s14  ;;  %s823_s19 = scalar_lea.vmem %s1292_s4, 4096 }
  0x58   : > { %p824_p12 = scmp.ne.s32.totalorder %s1292_s4, %s823_s19  ;;  %p1361_p0 = scmp.ne.s32.totalorder %s1352_s21, 0 }
  0x59   : > { %227 = vadd.xlane.f32.xlu0 %v226_v22  ;;  %v318_v22 = vsub.s32 %v315_v59, %v1185_v50  ;;  %v350_v59 = vadd.s32 4294967224, %v1183_v49  ;;  %s901_s24 = smov [#allocation7]  }
  0x5a   : > { %230 = vadd.xlane.f32.xlu1 %v229_v23  ;;  %v329_v23 = vadd.s32 4294967248, %v1183_v49  ;;  %p825_p2 = pnand %p824_p12, %p1361_p0  ;;  %s827_s25 = sshll.u32 %s901_s24, 4  ;;  %s828_s25 = int_to_ptr.vmem [resolvable:$false] %s827_s25 }
  0x5b   : > { %p830_p8 = scmp.lt.s32.totalorder %s1292_s4, %s828_s25 }
  0x5c   : > { %v332_v54 = vsub.s32 %v329_v23, %v1185_v50  ;;  %v364_v23 = vadd.s32 4294967208, %v1183_v49  ;;  %p826_p7 = pneg %p825_p2 }
  0x5d   : > { %233 = vadd.xlane.f32.xlu0 %v232_v28 }
  0x5e   : > { %236 = vadd.xlane.f32.xlu1 %v235_v29 }
  0x61   : > { %239 = vadd.xlane.f32.xlu0 %v238_v34 }
  0x62   : > { %242 = vadd.xlane.f32.xlu1 %v241_v35  ;;  %v325_v35 = vsub.s32 %v322_v3, %v1185_v50 }
  0x65   : > { %245 = vadd.xlane.f32.xlu0 %v244_v40  ;;  %v336_v40 = vadd.s32 4294967240, %v1183_v49 }
  0x66   : > { %248 = vadd.xlane.f32.xlu1 %v247_v41 }
  0x69   : > { %251 = vadd.xlane.f32.xlu0 %v250_v46 }
  0x6a   : > { %254 = vadd.xlane.f32.xlu1 %v253_v47 }
  0xd6   : > { %v210_v52 = vpop.xlane.xlu0 %209 }
  0xd7   : > { %v216_v55 = vpop.xlane.xlu1 %215  ;;  %v256_v57 = vmul.f32 0.00390625, %v210_v52 }
  0xd8   : > { %v258_v61 = vmul.f32 0.00390625, %v216_v55  ;;  %v343_v55 = vadd.s32 4294967232, %v1183_v49 }
  0xd9   : > { %v293_v16 = vrot.slane %v256_v57, %v292_v56 }
  0xda   : > { %v213_v62 = vpop.xlane.xlu0 %212  ;;  %v305_v28 = vrot.slane %v258_v61, %v304_v60 }
  0xdb   : > { %v257_v7 = vmul.f32 0.00390625, %v213_v62  ;;  %v219_v10 = vpop.xlane.xlu1 %218 }
  0xdc   : > { %v259_v11 = vmul.f32 0.00390625, %v219_v10  ;;  %v357_v10 = vadd.s32 4294967216, %v1183_v49 }
  0xdd   : > { %v298_v17 = vrot.slane %v257_v7, %v297_v58  ;;  %v339_v58 = vsub.s32 %v336_v40, %v1185_v50  ;;  %v346_v7 = vsub.s32 %v343_v55, %v1185_v50 }
  0xde   : > { %v312_v29 = vrot.slane %v259_v11, %v311_v63  ;;  %v222_v34 = vpop.xlane.xlu0 %221 }
  0xdf   : > { %v300_v41 = vsel %vm299_vm0, %v298_v17, %v293_v16  ;;  %v260_v46 = vmul.f32 0.00390625, %v222_v34  ;;  %v225_v47 = vpop.xlane.xlu1 %224 }
  0xe0   : > { %v307_v48 = vsel %vm306_vm1, %v305_v28, %v300_v41  ;;  %v261_v51 = vmul.f32 0.00390625, %v225_v47  ;;  %v360_v41 = vsub.s32 %v357_v10, %v1185_v50 }
  0xe1   : > { %v314_v52 = vsel %vm313_vm2, %v312_v29, %v307_v48  ;;  %v319_v53 = vrot.slane %v260_v46, %v318_v22  ;;  %v353_v22 = vsub.s32 %v350_v59, %v1185_v50  ;;  %v371_v46 = vadd.s32 4294967200, %v1183_v49 }
  0xe2   : > { %v326_v56 = vrot.slane %v261_v51, %v325_v35  ;;  %v228_v57 = vpop.xlane.xlu0 %227 }
  0xe3   : > { %v321_v60 = vsel %vm320_vm3, %v319_v53, %v314_v52  ;;  %v262_v61 = vmul.f32 0.00390625, %v228_v57  ;;  %v231_v62 = vpop.xlane.xlu1 %230  ;;  %v367_v52 = vsub.s32 %v364_v23, %v1185_v50  ;;  %v378_v53 = vadd.s32 4294967192, %v1183_v49 }
  0xe4   : > { %v263_v63 = vmul.f32 0.00390625, %v231_v62  ;;  %v328_v11 = vsel %vm327_vm4, %v326_v56, %v321_v60  ;;  %v374_v59 = vsub.s32 %v371_v46, %v1185_v50  ;;  %v385_v60 = vadd.s32 4294967184, %v1183_v49 }
  0xe5   : > { %v333_v3 = vrot.slane %v262_v61, %v332_v54 }
  0xe6   : > { %v340_v16 = vrot.slane %v263_v63, %v339_v58  ;;  %v234_v17 = vpop.xlane.xlu0 %233  ;;  %v388_v23 = vsub.s32 %v385_v60, %v1185_v50 }
  0xe7   : > { %v335_v28 = vsel %vm334_vm5, %v333_v3, %v328_v11  ;;  %v264_v29 = vmul.f32 0.00390625, %v234_v17  ;;  %v237_v34 = vpop.xlane.xlu1 %236  ;;  %v381_v3 = vsub.s32 %v378_v53, %v1185_v50 }
  0xe8   : > { %v265_v35 = vmul.f32 0.00390625, %v237_v34  ;;  %v342_v47 = vsel %vm341_vm6, %v340_v16, %v335_v28 }
  0xe9   : > { %v347_v40 = vrot.slane %v264_v29, %v346_v7  ;;  %v392_v7 = vadd.s32 4294967176, %v1183_v49 }
  0xea   : > { %v354_v48 = vrot.slane %v265_v35, %v353_v22  ;;  %v240_v51 = vpop.xlane.xlu0 %239 }
  0xeb   : > { %v349_v54 = vsel %vm348_vm7, %v347_v40, %v342_v47  ;;  %v266_v55 = vmul.f32 0.00390625, %v240_v51  ;;  %v243_v56 = vpop.xlane.xlu1 %242  ;;  %v395_v35 = vsub.s32 %v392_v7, %v1185_v50 }
  0xec   : > { %v267_v57 = vmul.f32 0.00390625, %v243_v56  ;;  %v356_v61 = vsel %vm355_vm8, %v354_v48, %v349_v54  ;;  %v402_v56 = vadd.s32 4294967294, %v1183_v49 }
  0xed   : > { %v361_v58 = vrot.slane %v266_v55, %v360_v41  ;;  %v413_v55 = vadd.s32 4294967295, %v1183_v49 }
  0xee   : > { %v368_v62 = vrot.slane %v267_v57, %v367_v52  ;;  %v246_v63 = vpop.xlane.xlu0 %245  ;;  %vm403_vm0 = vcmp.ge.s32.totalorder %v402_v56, 0  ;;  %v432_v57 = vadd.s32 1, %v1183_v49 }
  0xef   : > { %v363_v10 = vsel %vm362_vm9, %v361_v58, %v356_v61  ;;  %v268_v11 = vmul.f32 0.00390625, %v246_v63  ;;  %v249_v16 = vpop.xlane.xlu1 %248  ;;  %vm414_vm15 = vcmp.ge.s32.totalorder %v413_v55, 0  ;;  %v419_v58 = vstv %s699_s16 }
  0xf0   : > { %v269_v17 = vmul.f32 0.00390625, %v249_v16  ;;  %v370_v28 = vsel %vm369_vm10, %v368_v62, %v363_v10  ;;  %vm434_vm1 = vcmp.lt.s32.totalorder %v432_v57, 128  ;;  %v438_v16 = vstv %s701_s27 }
  0xf1   : > { %v375_v22 = vrot.slane %v268_v11, %v374_v59  ;;  %v408_v59 = vstv %s406_s17  ;;  %v443_v11 = vadd.s32 2, %v1183_v49  ;;  %v460_v49 = vsub.s32 0, %v1185_v50 }
  0xf2   : > { %v382_v29 = vrot.slane %v269_v17, %v381_v3  ;;  %v252_v34 = vpop.xlane.xlu0 %251  ;;  %v427_v3 = vstv %s700_s26 }
  0xf3   : > { %v377_v40 = vsel %vm376_vm11, %v375_v22, %v370_v28  ;;  %v270_v41 = vmul.f32 0.00390625, %v252_v34  ;;  %v255_v46 = vpop.xlane.xlu1 %254  ;;  %vm445_vm2 = vcmp.lt.s32.totalorder %v443_v11, 128 }
  0xf4   : > { %v271_v47 = vmul.f32 0.00390625, %v255_v46  ;;  %v384_v51 = vsel %vm383_vm12, %v382_v29, %v377_v40 }
  0xf5   : > { %v389_v48 = vrot.slane %v270_v41, %v388_v23 }
  0xf6   : > { %v396_v52 = vrot.slane %v271_v47, %v395_v35  ;;  %v449_v35 = vstv %s702_s30 }
  0xf7   : > { %v391_v53 = vsel %vm390_vm13, %v389_v48, %v384_v51 }
  0xf8   : > { %v398_v54 = vsel %vm397_vm14, %v396_v52, %v391_v53 }
  0xf9   : > { %411 = vrot.lane.b32.xlu1 %v398_v54, %s897_s20  ;;  %400 = vrot.lane.b32.xlu0 %v398_v54, %s898_s23  ;;  %v428_v23 = vmul.f32 %v427_v3, %v398_v54  ;;  %s829_s20 = scalar_lea.vmem %s828_s25, 8192 }
  0xfa   : > { %p831_p9 = scmp.lt.s32.totalorder %s829_s20, %s823_s19 }
  0xfc   : > { %p832_p10 = por %p831_p9, %p830_p8 }
  0xfd   : > { %430 = vrot.lane.b32.xlu1 %v398_v54, %s899_s29 }
  0xfe   : > { %p833_p1 = pnand %p832_p10, %p826_p7 }
 0x101   : > { %441 = vrot.lane.b32.xlu1 %v398_v54, %s900_s7 }
 0x16b   : > { %v412_v60 = vpop.permute.xlu1 %411  ;;  %v401_v61 = vpop.permute.xlu0 %400 }
 0x16c   : > { %v418_v62 = vsel %vm414_vm15, %v412_v60, 0.0  ;;  %v407_v63 = vsel %vm403_vm0, %v401_v61, 0.0 }
 0x16d   : > { %v420_v7 = vmul.f32 %v419_v58, %v418_v62  ;;  %v409_v10 = vmul.f32 %v408_v59, %v407_v63 }
 0x16f   : > { %v421_v17 = vadd.f32 %v420_v7, %v409_v10  ;;  %v431_v22 = vpop.permute.xlu1 %430 }
 0x170   : > { %v437_v28 = vsel %vm434_vm1, %v431_v22, 0.0 }
 0x171   : > { %v429_v29 = vadd.f32 %v428_v23, %v421_v17  ;;  %v439_v34 = vmul.f32 %v438_v16, %v437_v28 }
 0x173   : > { %v442_v40 = vpop.permute.xlu1 %441  ;;  %v440_v46 = vadd.f32 %v439_v34, %v429_v29 }
 0x174   : > { %v448_v41 = vsel %vm445_vm2, %v442_v40, 0.0 }
 0x175   : > { %v450_v47 = vmul.f32 %v449_v35, %v448_v41 }
 0x177   : > { %v451_v48 = vadd.f32 %v450_v47, %v440_v46 }
 0x179   : > { %v703_v51 = vmul.f32 -1.442695, %v451_v48 }
 0x17b   : > { %776 = vpow2.f32 %v703_v51 }
 0x188   : > { %v777_v52 = vpop.eup %776 }
 0x189   : > { %v455_v53 = vadd.f32 1.0, %v777_v52 }
 0x18b   : > { %778 = vrcp.f32 %v455_v53 }
 0x198   : > { %v779_v55 = vpop.eup %778 }
 0x199   : > { %v461_v56 = vrot.slane %v779_v55, %v460_v49 }
 0x19b   : > { %467 = vbcast.lane.b32.xlu1 %v461_v56, 264  ;;  %463 = vbcast.lane.b32.xlu0 %v461_v56, 256 }
 0x19f   : > { %475 = vbcast.lane.b32.xlu1 %v461_v56, 280  ;;  %471 = vbcast.lane.b32.xlu0 %v461_v56, 272 }
 0x1a3   : > { %483 = vbcast.lane.b32.xlu1 %v461_v56, 296  ;;  %479 = vbcast.lane.b32.xlu0 %v461_v56, 288 }
 0x1a7   : > { %491 = vbcast.lane.b32.xlu1 %v461_v56, 312  ;;  %487 = vbcast.lane.b32.xlu0 %v461_v56, 304 }
 0x1ab   : > { %499 = vbcast.lane.b32.xlu1 %v461_v56, 328  ;;  %495 = vbcast.lane.b32.xlu0 %v461_v56, 320 }
 0x1af   : > { %507 = vbcast.lane.b32.xlu1 %v461_v56, 344  ;;  %503 = vbcast.lane.b32.xlu0 %v461_v56, 336 }
 0x1b3   : > { %515 = vbcast.lane.b32.xlu1 %v461_v56, 360  ;;  %511 = vbcast.lane.b32.xlu0 %v461_v56, 352 }
 0x1b7   : > { %523 = vbcast.lane.b32.xlu1 %v461_v56, 376  ;;  %519 = vbcast.lane.b32.xlu0 %v461_v56, 368 }
 0x20d   : > { %v468_v50 = vpop.permute.xlu1 %467  ;;  %v464_v54 = vpop.permute.xlu0 %463 }
 0x20e   : > { %v527_v57 = vmul.f32 %v468_v50, %v1070_v5  ;;  %v528_v58 = vmul.f32 %v468_v50, %v1073_v6  ;;  %v525_v59 = vmul.f32 %v464_v54, %v1056_v0  ;;  %v526_v60 = vmul.f32 %v464_v54, %v1059_v1 }
 0x210   : > { %559 = vst [vmem:[%s1231_s28 + $0x10] sm:$0xff] %v527_v57  ;;  %560 = vst [vmem:[%s1231_s28 + $0x18] sm:$0xff] %v528_v58 }
 0x211   : > { %557 = vst [vmem:[%s1231_s28] sm:$0xff] %v525_v59  ;;  %558 = vst [vmem:[%s1231_s28 + $0x8] sm:$0xff] %v526_v60  ;;  %v476_v5 = vpop.permute.xlu1 %475  ;;  %v472_v0 = vpop.permute.xlu0 %471 }
 0x212   : > { %v531_v1 = vmul.f32 %v476_v5, %v1078_v8  ;;  %v532_v6 = vmul.f32 %v476_v5, %v1081_v9  ;;  %v529_v61 = vmul.f32 %v472_v0, %v1062_v2  ;;  %v530_v62 = vmul.f32 %v472_v0, %v1067_v4 }
 0x214   : > { %563 = vst [vmem:[%s1231_s28 + $0x30] sm:$0xff] %v531_v1  ;;  %564 = vst [vmem:[%s1231_s28 + $0x38] sm:$0xff] %v532_v6 }
 0x215   : > { %561 = vst [vmem:[%s1231_s28 + $0x20] sm:$0xff] %v529_v61  ;;  %562 = vst [vmem:[%s1231_s28 + $0x28] sm:$0xff] %v530_v62  ;;  %v484_v63 = vpop.permute.xlu1 %483  ;;  %v480_v3 = vpop.permute.xlu0 %479 }
 0x216   : > { %v535_v7 = vmul.f32 %v484_v63, %v1094_v14  ;;  %v536_v8 = vmul.f32 %v484_v63, %v1097_v15  ;;  %v533_v9 = vmul.f32 %v480_v3, %v1088_v12  ;;  %v534_v2 = vmul.f32 %v480_v3, %v1091_v13 }
 0x218   : > { %567 = vst [vmem:[%s1231_s28 + $0x50] sm:$0xff] %v535_v7  ;;  %568 = vst [vmem:[%s1231_s28 + $0x58] sm:$0xff] %v536_v8 }
 0x219   : > { %565 = vst [vmem:[%s1231_s28 + $0x40] sm:$0xff] %v533_v9  ;;  %566 = vst [vmem:[%s1231_s28 + $0x48] sm:$0xff] %v534_v2  ;;  %v492_v4 = vpop.permute.xlu1 %491  ;;  %v488_v10 = vpop.permute.xlu0 %487 }
 0x21a   : > { %v539_v11 = vmul.f32 %v492_v4, %v1110_v20  ;;  %v540_v14 = vmul.f32 %v492_v4, %v1113_v21  ;;  %v537_v15 = vmul.f32 %v488_v10, %v1104_v18  ;;  %v538_v12 = vmul.f32 %v488_v10, %v1107_v19 }
 0x21c   : > { %571 = vst [vmem:[%s1231_s28 + $0x70] sm:$0xff] %v539_v11  ;;  %572 = vst [vmem:[%s1231_s28 + $0x78] sm:$0xff] %v540_v14 }
 0x21d   : > { %569 = vst [vmem:[%s1231_s28 + $0x60] sm:$0xff] %v537_v15  ;;  %570 = vst [vmem:[%s1231_s28 + $0x68] sm:$0xff] %v538_v12  ;;  %v500_v13 = vpop.permute.xlu1 %499  ;;  %v496_v16 = vpop.permute.xlu0 %495 }
 0x21e   : > { %v543_v17 = vmul.f32 %v500_v13, %v1126_v26  ;;  %v544_v20 = vmul.f32 %v500_v13, %v1129_v27  ;;  %v541_v21 = vmul.f32 %v496_v16, %v1120_v24  ;;  %v542_v18 = vmul.f32 %v496_v16, %v1123_v25 }
 0x220   : > { %575 = vst [vmem:[%s1231_s28 + $0x90] sm:$0xff] %v543_v17  ;;  %576 = vst [vmem:[%s1231_s28 + $0x98] sm:$0xff] %v544_v20 }
 0x221   : > { %573 = vst [vmem:[%s1231_s28 + $0x80] sm:$0xff] %v541_v21  ;;  %574 = vst [vmem:[%s1231_s28 + $0x88] sm:$0xff] %v542_v18  ;;  %v508_v19 = vpop.permute.xlu1 %507  ;;  %v504_v22 = vpop.permute.xlu0 %503 }
 0x222   : > { %v547_v23 = vmul.f32 %v508_v19, %v1142_v32  ;;  %v548_v26 = vmul.f32 %v508_v19, %v1145_v33  ;;  %v545_v27 = vmul.f32 %v504_v22, %v1136_v30  ;;  %v546_v24 = vmul.f32 %v504_v22, %v1139_v31 }
 0x224   : > { %579 = vst [vmem:[%s1231_s28 + $0xb0] sm:$0xff] %v547_v23  ;;  %580 = vst [vmem:[%s1231_s28 + $0xb8] sm:$0xff] %v548_v26 }
 0x225   : > { %577 = vst [vmem:[%s1231_s28 + $0xa0] sm:$0xff] %v545_v27  ;;  %578 = vst [vmem:[%s1231_s28 + $0xa8] sm:$0xff] %v546_v24  ;;  %v516_v25 = vpop.permute.xlu1 %515  ;;  %v512_v28 = vpop.permute.xlu0 %511 }
 0x226   : > { %v551_v29 = vmul.f32 %v516_v25, %v1158_v38  ;;  %v552_v32 = vmul.f32 %v516_v25, %v1161_v39  ;;  %v549_v34 = vmul.f32 %v512_v28, %v1152_v36  ;;  %v550_v33 = vmul.f32 %v512_v28, %v1155_v37 }
 0x228   : > { %583 = vst [vmem:[%s1231_s28 + $0xd0] sm:$0xff] %v551_v29  ;;  %584 = vst [vmem:[%s1231_s28 + $0xd8] sm:$0xff] %v552_v32 }
 0x229   : > { %581 = vst [vmem:[%s1231_s28 + $0xc0] sm:$0xff] %v549_v34  ;;  %582 = vst [vmem:[%s1231_s28 + $0xc8] sm:$0xff] %v550_v33  ;;  %v524_v30 = vpop.permute.xlu1 %523  ;;  %v520_v31 = vpop.permute.xlu0 %519 }
 0x22a   : > { %v555_v36 = vmul.f32 %v524_v30, %v1174_v44  ;;  %v556_v37 = vmul.f32 %v524_v30, %v1177_v45  ;;  %v553_v38 = vmul.f32 %v520_v31, %v1168_v42  ;;  %v554_v39 = vmul.f32 %v520_v31, %v1171_v43 }
 0x22c   : > { %587 = vst [vmem:[%s1231_s28 + $0xf0] sm:$0xff] %v555_v36  ;;  %588 = vst [vmem:[%s1231_s28 + $0xf8] sm:$0xff] %v556_v37 }
 0x22d   : > { %585 = vst [vmem:[%s1231_s28 + $0xe0] sm:$0xff] %v553_v38  ;;  %586 = vst [vmem:[%s1231_s28 + $0xe8] sm:$0xff] %v554_v39 }
 0x22e   : > { %836 = shalt.err (!%p833_p1)
}
 0x22f   : > { %s837_s23 = scalar_lea.hbm %s1290_s8, 4096  ;;  %s841_s16 = scalar_lea.hbm %s1345_s2, 8192 }
 0x230   : > { %p838_p4 = scmp.ne.s32.totalorder %s1290_s8, %s837_s23  ;;  %p842_p6 = scmp.lt.s32.totalorder %s1290_s8, %s1345_s2 }
 0x231   : > { %p843_p13 = scmp.lt.s32.totalorder %s841_s16, %s837_s23 }
 0x232   : > { %p839_p11 = pnand %p838_p4, %p1361_p0 }
 0x233   : > { %p844_p3 = por %p843_p13, %p842_p6 }
 0x234   : > { %p840_p5 = pneg %p839_p11 }
 0x236   : > { %p845_p12 = pnand %p844_p3, %p840_p5 }
 0x238   : > { %848 = shalt.err (!%p845_p12)
}
 0x239   : > { %s902_s27 = smov 256   ;;  %s903_s30 = smov 16  }
 0x23a   : > { %717 = dma.vmem_to_hbm [thread:$0]  (%p1361_p0), %s1292_s4, 4096, %s1290_s8, %s590_s13, %s902_s27, %s902_s27, %s903_s30  }
 0x23b PF: > { %s618_s28 = sand.u32 1, %s879_s9   ;;  %p1362_p2 = scmp.ne.s32.totalorder %s1353_s22, 0 }
 0x23c   : > { %p1363_p7 = scmp.ge.s32.totalorder %s891_s12, 2  ;;  %s619_s3 = scalar_lea.sflag [#allocation4], %s618_s28 }
 0x23e   : > { %p728_p8 = pnand %p1363_p7, %p1362_p2 }
 0x240   : > { %p729_p9 = pneg %p728_p8 }
 0x242   : > { %874 = dma.done.wait (%p729_p9), %s619_s3, 4096  }
 0x243   : > { %876 = vsyncadd (%p729_p9), %s619_s3, 4294963200  ;;  %p16_p10 = scmp.ge.s32.totalorder %s944_s15, 4   ;;  %s1364_s9 = smov %s883_s10 }
 0x244   : > { %s1365_s10 = smov %s887_s11  ;;  %s1366_s11 = smov %s956_s18 }
 0x245   : > { %s1367_s12 = smov %s944_s15  ;;  %18 = sbr.rel (!%p16_p10) target bundleno = 6 (0x6), region = 78 }
 0x24a   :  { %624 = vsyncpa [#allocation3], 1 }
 0x24b   :  { %626 = vsyncpa [#allocation3 + $0x1], 1 }
 0x24c   :  { %627 = vsyncpa [#allocation4], 1 }
 0x24d   :  { %629 = vsyncpa [#allocation4 + $0x1], 1 }
 0x24e   :  { %630 = vsyncpa [#allocation5], 1 }
 0x24f   :  { %632 = vsyncpa [#allocation5 + $0x1], 1 }

</bundles_post_ra>
